<compile_context>
chip_gen: v7x
topology: tpu7x:2x2x1
jax: 0.10.0
libtpu: 0.0.40
codegen_flags: <defaults>
</compile_context>

<pallas_src>
import functools

import jax
import jax.numpy as jnp
from jax import lax
from jax.experimental import pallas as pl
from jax.experimental.pallas import tpu as pltpu


def _round_up(x, m):
    return ((x + m - 1) // m) * m


# ----------------------------------------------------------------------------
# Pallas kernel: one (TILE, TILE) tile of the pairwise contrastive loss.
# ----------------------------------------------------------------------------
def _pair_loss_kernel(n, tile, margin,
                      emb_row_ref, embT_col_ref, lab_col_ref, lab_row_ref,
                      out_ref):
    i = pl.program_id(0)   # row tile
    j = pl.program_id(1)   # col tile (reduction axis, "arbitrary")

    @pl.when(j == 0)
    def _init():
        out_ref[...] = jnp.zeros_like(out_ref)

    # Symmetry: sim and every mask are symmetric -> only visit j >= i and
    # weight strictly-off-diagonal tiles by 2.
    @pl.when(j >= i)
    def _compute():
        a = emb_row_ref[...]                                    # (T, Dp) bf16
        bT = embT_col_ref[...]                                  # (Dp, T) bf16
        sim = jnp.dot(a, bT, preferred_element_type=jnp.float32)  # (T, T) f32

        lab_c = lab_col_ref[...]                                # (T, 1) int32
        lab_r = lab_row_ref[...]                                # (1, T) int32
        same = lab_c == lab_r                                   # (T, T) bool

        row_l = lax.broadcasted_iota(jnp.int32, (tile, tile), 0)
        col_l = lax.broadcasted_iota(jnp.int32, (tile, tile), 1)
        g_row = row_l + i * tile
        g_col = col_l + j * tile
        valid = (g_row < n) & (g_col < n)
        not_diag = g_row != g_col

        pos = 1.0 - sim
        neg = jnp.maximum(sim - margin, 0.0)
        contrib = jnp.where(same, jnp.where(not_diag, pos, 0.0), neg)
        contrib = jnp.where(valid, contrib, 0.0)                # (T, T) f32

        weight = jnp.where(j == i, 1.0, 2.0)
        # Reduce to a lane-dense (8, T) partial (layout-friendly sublane fold).
        partial = contrib.reshape(tile // 8, 8, tile).sum(axis=0)
        out_ref[...] += weight * partial


# ----------------------------------------------------------------------------
# Wrapper: normalize + pad + pre-transpose host-side, tiled pallas_call,
# tiny final reduction in JAX.
# ----------------------------------------------------------------------------
@functools.partial(jax.jit, static_argnames=("margin",))
def contrastive_loss_pallas(embeddings, labels, *, margin=0.5):
    """embeddings: (N, D) f32, labels: (N,) int -> scalar f32 loss."""
    n, d = embeddings.shape
    tile = 128 if n <= 128 else 256
    n_pad = _round_up(max(n, tile), tile)
    d_pad = _round_up(max(d, 128), 128)

    # L2-normalize once (zero rows stay zero), cast to bf16 for the MXU,
    # and build the transposed RHS with a one-time XLA transpose.
    e = embeddings.astype(jnp.float32)
    e = e * lax.rsqrt(jnp.sum(e * e, axis=-1, keepdims=True) + 1e-12)
    e = e.astype(jnp.bfloat16)

    emb_p = jnp.zeros((n_pad, d_pad), jnp.bfloat16).at[:n, :d].set(e)
    embT_p = emb_p.T                                            # (Dp, Np)

    lab_p = jnp.zeros((n_pad,), jnp.int32).at[:n].set(labels.astype(jnp.int32))
    lab_col = lab_p.reshape(n_pad, 1)
    lab_row = lab_p.reshape(1, n_pad)

    n_tiles = n_pad // tile
    kernel = functools.partial(_pair_loss_kernel, int(n), int(tile),
                               float(margin))

    partial_sums = pl.pallas_call(
        kernel,
        out_shape=jax.ShapeDtypeStruct((n_tiles * 8, tile), jnp.float32),
        grid=(n_tiles, n_tiles),
        in_specs=[
            pl.BlockSpec((tile, d_pad), lambda i, j: (i, 0)),   # rows
            pl.BlockSpec((d_pad, tile), lambda i, j: (0, j)),   # cols (pre-T)
            pl.BlockSpec((tile, 1), lambda i, j: (i, 0)),       # row labels
            pl.BlockSpec((1, tile), lambda i, j: (0, j)),       # col labels
        ],
        out_specs=pl.BlockSpec((8, tile), lambda i, j: (i, 0)),
        compiler_params=pltpu.CompilerParams(
            dimension_semantics=("parallel", "arbitrary"),
            vmem_limit_bytes=32 * 1024 * 1024),
    )(emb_p, embT_p, lab_col, lab_row)

    num = jnp.sum(partial_sums)
    den = jnp.maximum(jnp.float32(n * (n - 1)), 1.0)
    return num / den


# Plain-JAX reference (only used for the correctness check in __main__).
def contrastive_loss_ref(embeddings, labels, margin=0.5):
    e = embeddings.astype(jnp.float32)
    e = e / jnp.sqrt(jnp.sum(e * e, axis=-1, keepdims=True) + 1e-12)
    sim = e @ e.T
    same = labels[:, None] == labels[None, :]
    n = embeddings.shape[0]
    not_diag = ~jnp.eye(n, dtype=bool)
    pos_mask = (same & not_diag).astype(jnp.float32)
    neg_mask = (~same).astype(jnp.float32)
    num = jnp.sum((1.0 - sim) * pos_mask) + jnp.sum(
        jnp.maximum(sim - margin, 0.0) * neg_mask)
    den = jnp.maximum(jnp.sum(pos_mask) + jnp.sum(neg_mask), 1.0)
    return num / den


# ----------------------------------------------------------------------------
# CrossBatchMemory: circular memory bookkeeping (glue) + Pallas loss kernel.
# ----------------------------------------------------------------------------
class CrossBatchMemory:
    # TODO(synk): `loss` and `miner` are injected callables in the original
    # module; a concrete cosine contrastive loss is used here and no miner.
    def __init__(self, embedding_size, memory_size=1024, margin=0.5):
        self.memory_size = memory_size
        # PyTorch uses int64 labels; JAX default int32 is used here.
        self.embedding_memory = jnp.zeros((memory_size, embedding_size),
                                          jnp.float32)
        self.label_memory = jnp.zeros((memory_size,), jnp.int32)
        self.has_been_filled = False
        self.queue_idx = 0
        self.margin = margin

    def add_to_memory(self, embeddings, labels, batch_size):
        end_idx = (self.queue_idx + batch_size - 1) % self.memory_size + 1
        if end_idx > self.queue_idx:
            self.embedding_memory = self.embedding_memory.at[
                self.queue_idx:end_idx].set(embeddings)
            self.label_memory = self.label_memory.at[
                self.queue_idx:end_idx].set(labels)
        else:
            se = self.memory_size - self.queue_idx
            self.embedding_memory = self.embedding_memory.at[
                self.queue_idx:].set(embeddings[:se])
            self.embedding_memory = self.embedding_memory.at[
                :end_idx].set(embeddings[se:])
            self.label_memory = self.label_memory.at[
                self.queue_idx:].set(labels[:se])
            self.label_memory = self.label_memory.at[:end_idx].set(labels[se:])
        prev_queue_idx = self.queue_idx
        self.queue_idx = (self.queue_idx + batch_size) % self.memory_size
        if not self.has_been_filled and self.queue_idx <= prev_queue_idx:
            self.has_been_filled = True

    def forward(self, embeddings, labels):
        assert embeddings.shape[0] <= self.embedding_memory.shape[0]
        batch_size = embeddings.shape[0]
        embeddings = embeddings.astype(jnp.float32)
        labels = labels.astype(jnp.int32)
        self.add_to_memory(embeddings, labels, batch_size)
        if not self.has_been_filled:
            E_mem = self.embedding_memory[:self.queue_idx]
            L_mem = self.label_memory[:self.queue_idx]
        else:
            E_mem = self.embedding_memory
            L_mem = self.label_memory
        combined_embeddings = jnp.concatenate([embeddings, E_mem], axis=0)
        combined_labels = jnp.concatenate([labels, L_mem], axis=0)
        loss = contrastive_loss_pallas(combined_embeddings, combined_labels,
                                       margin=self.margin)
        return loss, combined_labels


if __name__ == "__main__":
    key = jax.random.PRNGKey(0)
    k1, k2, k3, k4 = jax.random.split(key, 4)

    memory_size = 64
    embedding_size = 32
    batch = 8

    xbm = CrossBatchMemory(embedding_size, memory_size=memory_size, margin=0.5)

    emb1 = jax.random.normal(k1, (batch, embedding_size), jnp.float32)
    lab1 = jax.random.randint(k2, (batch,), 0, 4, jnp.int32)
    emb2 = jax.random.normal(k3, (batch, embedding_size), jnp.float32)
    lab2 = jax.random.randint(k4, (batch,), 0, 4, jnp.int32)

    # Two forward passes: second one mixes the batch with the filled memory.
    loss1, comb_lab1 = xbm.forward(emb1, lab1)
    loss2, comb_lab2 = xbm.forward(emb2, lab2)
    jax.block_until_ready((loss1, comb_lab1, loss2, comb_lab2))

    # Sanity-check the Pallas kernel against a plain-JAX f32 reference on the
    # second (non-trivial) combined set.  Tolerance accounts for the bf16
    # cast feeding the MXU (f32 accumulation).
    ref_comb_emb = jnp.concatenate(
        [emb2, xbm.embedding_memory[:xbm.queue_idx]], axis=0)
    ref_comb_lab = jnp.concatenate(
        [lab2, xbm.label_memory[:xbm.queue_idx]], axis=0)
    ref_loss2 = contrastive_loss_ref(ref_comb_emb, ref_comb_lab, 0.5)
    assert jnp.allclose(loss2, ref_loss2, atol=5e-3, rtol=5e-3), (
        float(loss2), float(ref_loss2))
    assert comb_lab2.shape == (batch + xbm.queue_idx,)

    print("KERNEL_OK")
</pallas_src>

<mosaic_0001>
module attributes {stable_mosaic.version = 11 : i64} {
  func.func @_pair_loss_kernel(%arg0: i32, %arg1: i32, %arg2: memref<128x128xbf16, #tpu.memory_space<vmem>>, %arg3: memref<128x128xbf16, #tpu.memory_space<vmem>>, %arg4: memref<128x1xi32, #tpu.memory_space<vmem>>, %arg5: memref<1x128xi32, #tpu.memory_space<vmem>>, %arg6: memref<8x128xf32, #tpu.memory_space<vmem>>) attributes {dimension_semantics = [#tpu.dimension_semantics<parallel>, #tpu.dimension_semantics<arbitrary>], iteration_bounds = array<i64: 1, 1>, scalar_prefetch = 0 : i64, scratch_operands = 0 : i64, tpu.core_type = #tpu.core_type<tc>, window_params = [{transform_indices = @transform_0, window_bounds = array<i64: 128, 128>}, {transform_indices = @transform_1, window_bounds = array<i64: 128, 128>}, {transform_indices = @transform_2, window_bounds = array<i64: 128, 1>}, {transform_indices = @transform_3, window_bounds = array<i64: 1, 128>}, {transform_indices = @transform_4, window_bounds = array<i64: 8, 128>}]} {
    %c0_i32 = arith.constant 0 : i32
    %0 = arith.cmpi eq, %arg1, %c0_i32 : i32
    %1 = arith.extui %0 : i1 to i32
    %c0_i32_0 = arith.constant 0 : i32
    %2 = arith.cmpi ne, %1, %c0_i32_0 : i32
    scf.if %2 {
      %cst = arith.constant 0.000000e+00 : f32
      %6 = vector.broadcast %cst : f32 to vector<8x128xf32>
      %c0 = arith.constant 0 : index
      %c0_2 = arith.constant 0 : index
      %7 = vector.load %arg6[%c0, %c0_2] : memref<8x128xf32, #tpu.memory_space<vmem>>, vector<8x128xf32>
      tpu.vector_store %arg6[%c0, %c0_2], %6 {strides = array<i32>} : memref<8x128xf32, #tpu.memory_space<vmem>>, vector<8x128xf32>,
    } else {
    }
    %3 = arith.cmpi sge, %arg1, %arg0 : i32
    %4 = arith.extui %3 : i1 to i32
    %c0_i32_1 = arith.constant 0 : i32
    %5 = arith.cmpi ne, %4, %c0_i32_1 : i32
    scf.if %5 {
      %c0 = arith.constant 0 : index
      %c0_2 = arith.constant 0 : index
      %6 = vector.load %arg2[%c0, %c0_2] : memref<128x128xbf16, #tpu.memory_space<vmem>>, vector<128x128xbf16>
      %c0_3 = arith.constant 0 : index
      %c0_4 = arith.constant 0 : index
      %7 = vector.load %arg3[%c0_3, %c0_4] : memref<128x128xbf16, #tpu.memory_space<vmem>>, vector<128x128xbf16>
      %cst = arith.constant dense<0.000000e+00> : vector<128x128xf32>
      %8 = tpu.matmul %6, %7, %cst {dimension_numbers = #tpu.dot_dimension_numbers<[1], [0], [0], [1], [0, 0, 1, 1], [], []>} : vector<128x128xbf16>, vector<128x128xbf16>, vector<128x128xf32> -> vector<128x128xf32>
      %c0_5 = arith.constant 0 : index
      %c0_6 = arith.constant 0 : index
      %9 = vector.load %arg4[%c0_5, %c0_6] : memref<128x1xi32, #tpu.memory_space<vmem>>, vector<128x1xi32>
      %c0_7 = arith.constant 0 : index
      %c0_8 = arith.constant 0 : index
      %10 = vector.load %arg5[%c0_7, %c0_8] : memref<1x128xi32, #tpu.memory_space<vmem>>, vector<1x128xi32>
      %11 = vector.broadcast %9 : vector<128x1xi32> to vector<128x128xi32>
      %12 = vector.broadcast %10 : vector<1x128xi32> to vector<128x128xi32>
      %13 = arith.cmpi eq, %11, %12 : vector<128x128xi32>
      %14 = tpu.iota {dimensions = array<i32: 0>} : vector<128x128xi32>
      %15 = tpu.iota {dimensions = array<i32: 1>} : vector<128x128xi32>
      %c128_i32 = arith.constant 128 : i32
      %16 = arith.muli %arg0, %c128_i32 : i32
      %17 = vector.broadcast %16 : i32 to vector<128x128xi32>
      %18 = arith.addi %14, %17 : vector<128x128xi32>
      %c128_i32_9 = arith.constant 128 : i32
      %19 = arith.muli %arg1, %c128_i32_9 : i32
      %20 = vector.broadcast %19 : i32 to vector<128x128xi32>
      %21 = arith.addi %15, %20 : vector<128x128xi32>
      %c16_i32 = arith.constant 16 : i32
      %22 = vector.broadcast %c16_i32 : i32 to vector<128x128xi32>
      %23 = arith.cmpi slt, %18, %22 : vector<128x128xi32>
      %c16_i32_10 = arith.constant 16 : i32
      %24 = vector.broadcast %c16_i32_10 : i32 to vector<128x128xi32>
      %25 = arith.cmpi slt, %21, %24 : vector<128x128xi32>
      %26 = arith.andi %23, %25 : vector<128x128xi1>
      %27 = arith.cmpi ne, %18, %21 : vector<128x128xi32>
      %cst_11 = arith.constant 1.000000e+00 : f32
      %28 = vector.broadcast %cst_11 : f32 to vector<128x128xf32>
      %29 = arith.subf %28, %8 : vector<128x128xf32>
      %cst_12 = arith.constant 5.000000e-01 : f32
      %30 = vector.broadcast %cst_12 : f32 to vector<128x128xf32>
      %31 = arith.subf %8, %30 : vector<128x128xf32>
      %cst_13 = arith.constant 0.000000e+00 : f32
      %32 = vector.broadcast %cst_13 : f32 to vector<128x128xf32>
      %33 = arith.maximumf %31, %32 : vector<128x128xf32>
      %cst_14 = arith.constant 0.000000e+00 : f32
      %34 = vector.broadcast %cst_14 : f32 to vector<128x128xf32>
      %35 = arith.select %27, %29, %34 : vector<128x128xi1>, vector<128x128xf32>
      %36 = arith.select %13, %35, %33 : vector<128x128xi1>, vector<128x128xf32>
      %cst_15 = arith.constant 0.000000e+00 : f32
      %37 = vector.broadcast %cst_15 : f32 to vector<128x128xf32>
      %38 = arith.select %26, %36, %37 : vector<128x128xi1>, vector<128x128xf32>
      %39 = arith.cmpi eq, %arg1, %arg0 : i32
      %cst_16 = arith.constant 1.000000e+00 : f32
      %cst_17 = arith.constant 2.000000e+00 : f32
      %40 = arith.select %39, %cst_16, %cst_17 : f32
      %41 = vector.shape_cast %38 : vector<128x128xf32> to vector<16x8x128xf32>
      %cst_18 = arith.constant dense<0.000000e+00> : vector<8x128xf32>
      %42 = vector.multi_reduction <add>, %41, %cst_18 [0] : vector<16x8x128xf32> to vector<8x128xf32>
      %c0_19 = arith.constant 0 : index
      %c0_20 = arith.constant 0 : index
      %43 = vector.load %arg6[%c0_19, %c0_20] : memref<8x128xf32, #tpu.memory_space<vmem>>, vector<8x128xf32>
      %44 = vector.broadcast %40 : f32 to vector<8x128xf32>
      %45 = arith.mulf %44, %42 : vector<8x128xf32>
      %46 = arith.addf %43, %45 : vector<8x128xf32>
      %c0_21 = arith.constant 0 : index
      %c0_22 = arith.constant 0 : index
      %47 = vector.load %arg6[%c0_21, %c0_22] : memref<8x128xf32, #tpu.memory_space<vmem>>, vector<8x128xf32>
      tpu.vector_store %arg6[%c0_21, %c0_22], %46 {strides = array<i32>} : memref<8x128xf32, #tpu.memory_space<vmem>>, vector<8x128xf32>,
    } else {
    }
    return
  }
  func.func @transform_0(%arg0: i32, %arg1: i32) -> (i32, i32) {
    %c0_i32 = arith.constant 0 : i32
    %c0_i32_0 = arith.constant 0 : i32
    return %arg0, %c0_i32 : i32, i32
  }
  func.func @transform_1(%arg0: i32, %arg1: i32) -> (i32, i32) {
    %c0_i32 = arith.constant 0 : i32
    %c0_i32_0 = arith.constant 0 : i32
    return %c0_i32, %arg1 : i32, i32
  }
  func.func @transform_2(%arg0: i32, %arg1: i32) -> (i32, i32) {
    %c0_i32 = arith.constant 0 : i32
    %c0_i32_0 = arith.constant 0 : i32
    return %arg0, %c0_i32 : i32, i32
  }
  func.func @transform_3(%arg0: i32, %arg1: i32) -> (i32, i32) {
    %c0_i32 = arith.constant 0 : i32
    %c0_i32_0 = arith.constant 0 : i32
    return %c0_i32, %arg1 : i32, i32
  }
  func.func @transform_4(%arg0: i32, %arg1: i32) -> (i32, i32) {
    %c0_i32 = arith.constant 0 : i32
    %c0_i32_0 = arith.constant 0 : i32
    return %arg0, %c0_i32 : i32, i32
  }
}

</mosaic_0001>

<bundles_post_ra>
// kernel: contrastive_loss_pallas.1
= control target key start
LH: loop header
LB: loop body
LE: loop exit
PB: predicated region body
PF: predicated region fallthrough
CT: control target
= control target key end

     0   :  { %v664_v1 = vmov 0   ;;  %v337_v19 = vlaneseq  ;;  %s750_s1 = inlined_call_operand.vmem [shape: bf16[128,128], index: 1, kind: input, shape index: {}]   ;;  %s751_s0 = inlined_call_operand.vmem [shape: bf16[128,128], index: 0, kind: input, shape index: {}]   ;;  %s752_s2 = inlined_call_operand.vmem [shape: s32[128,1], index: 2, kind: input, shape index: {}]   ;;  %s753_s3 = inlined_call_operand.vmem [shape: s32[1,128], index: 3, kind: input, shape index: {}]   ;;  %s754_s4 = inlined_call_operand.vmem [shape: f32[8,128], index: 4, kind: output, shape index: {}]  }
   0x1   :  { %v648_v0 = vld [vmem:[%s750_s1] sm:$0xff]   ;;  %647 = vset.pattern.permute.xlu0 %v664_v1  ;;  %v649_v2 = vld [vmem:[%s750_s1 + $0x8] sm:$0xff]   ;;  %v650_v3 = vld [vmem:[%s750_s1 + $0x10] sm:$0xff]  }
   0x2   :  { %597 = vmatprep.subr.bf16.mxu0 %v648_v0  ;;  %629 = vmatprep.subr.bf16.mxu1 %v648_v0  ;;  %v651_v4 = vld [vmem:[%s750_s1 + $0x18] sm:$0xff]   ;;  %v656_v5 = vld [vmem:[%s751_s0] sm:$0xff]   ;;  %v653_v8 = vld [vmem:[%s750_s1 + $0x28] sm:$0xff]   ;;  %v338_v20 = vshrl.u32 %v337_v19, 7  ;;  %v355_v21 = vand.u32 127, %v337_v19 }
   0x3   :  { %598 = vmatpush3.bf16.msra.mxu0 %v648_v0  ;;  %637 = vmatpush3.bf16.msra.mxu1 %v648_v0  ;;  %v657_v6 = vld [vmem:[%s751_s0 + $0x20] sm:$0xff]   ;;  %v253_v10 = vld [vmem:[%s752_s2 + $0x8] sm:$0xff]  ;;  %v654_v11 = vld [vmem:[%s750_s1 + $0x30] sm:$0xff]  }
   0x4   :  { %599 = vmatprep.subr.bf16.mxu0 %v649_v2  ;;  %630 = vmatprep.subr.bf16.mxu1 %v649_v2  ;;  %v652_v7 = vld [vmem:[%s750_s1 + $0x20] sm:$0xff]   ;;  %v655_v12 = vld [vmem:[%s750_s1 + $0x38] sm:$0xff]   ;;  %v658_v13 = vld [vmem:[%s751_s0 + $0x8] sm:$0xff]   ;;  %v339_v23 = vadd.s32 8, %v338_v20  ;;  %vm410_vm0 = vcmp.ne.s32.totalorder %v338_v20, %v355_v21  ;;  %vm393_vm3 = vcmp.lt.s32.totalorder %v355_v21, 16 }
   0x5   :  { %613 = vmatprep.mubr.bf16.mxu0 %v656_v5  ;;  %621 = vmatprep.mubr.bf16.mxu1 %v657_v6  ;;  %v252_v9 = vld [vmem:[%s752_s2] sm:$0xff]  ;;  %v659_v14 = vld [vmem:[%s751_s0 + $0x28] sm:$0xff]   ;;  %v660_v15 = vld [vmem:[%s751_s0 + $0x10] sm:$0xff]  }
   0x6   :  { %270 = vperm.xlu0 %647, %v252_v9   ;;  %v661_v16 = vld [vmem:[%s751_s0 + $0x30] sm:$0xff]   ;;  %v662_v17 = vld [vmem:[%s751_s0 + $0x18] sm:$0xff]   ;;  %v564_v28 = vld [vmem:[%s753_s3] ss:$0 sm:$0xff]  ;;  %vm411_vm1 = vcmp.ne.s32.totalorder %v339_v23, %v355_v21 }
   0x7   :  { %600 = vmatpush3.bf16.msra.mxu0 %v649_v2  ;;  %638 = vmatpush3.bf16.msra.mxu1 %v649_v2  ;;  %v663_v18 = vld [vmem:[%s751_s0 + $0x38] sm:$0xff]  }
   0x8   :  { %601 = vmatprep.subr.bf16.mxu0 %v650_v3  ;;  %631 = vmatprep.subr.bf16.mxu1 %v650_v3 }
   0xa   :  { %273 = vperm.xlu0 %647, %v253_v10  }
   0xb   :  { %602 = vmatpush3.bf16.msra.mxu0 %v650_v3  ;;  %639 = vmatpush3.bf16.msra.mxu1 %v650_v3 }
   0xc   :  { %603 = vmatprep.subr.bf16.mxu0 %v651_v4  ;;  %632 = vmatprep.subr.bf16.mxu1 %v651_v4 }
   0xf   :  { %604 = vmatpush3.bf16.msra.mxu0 %v651_v4  ;;  %640 = vmatpush3.bf16.msra.mxu1 %v651_v4 }
  0x10   :  { %605 = vmatprep.subr.bf16.mxu0 %v652_v7  ;;  %633 = vmatprep.subr.bf16.mxu1 %v652_v7 }
  0x13   :  { %606 = vmatpush3.bf16.msra.mxu0 %v652_v7  ;;  %641 = vmatpush3.bf16.msra.mxu1 %v652_v7 }
  0x14   :  { %607 = vmatprep.subr.bf16.mxu0 %v653_v8  ;;  %634 = vmatprep.subr.bf16.mxu1 %v653_v8 }
  0x17   :  { %608 = vmatpush3.bf16.msra.mxu0 %v653_v8  ;;  %642 = vmatpush3.bf16.msra.mxu1 %v653_v8 }
  0x18   :  { %609 = vmatprep.subr.bf16.mxu0 %v654_v11  ;;  %635 = vmatprep.subr.bf16.mxu1 %v654_v11 }
  0x1b   :  { %610 = vmatpush3.bf16.msra.mxu0 %v654_v11  ;;  %643 = vmatpush3.bf16.msra.mxu1 %v654_v11 }
  0x1c   :  { %611 = vmatprep.subr.bf16.mxu0 %v655_v12  ;;  %636 = vmatprep.subr.bf16.mxu1 %v655_v12 }
  0x1f   :  { %612 = vmatpush3.bf16.msra.mxu0 %v655_v12  ;;  %644 = vmatpush3.bf16.msra.mxu1 %v655_v12 }
  0x22   :  { %614 = vmatmul.mubr.bf16.vlgmr.msra.gmra.mrb[0].mxu0 %v658_v13  ;;  %622 = vmatmul.mubr.bf16.vlgmr.msra.gmra.mrb[0].mxu1 %v659_v14 }
  0x23   :  { %617 = vmatprep.mubr.bf16.mxu0 %v660_v15  ;;  %625 = vmatprep.mubr.bf16.mxu1 %v661_v16 }
  0x2a   :  { %618 = vmatmul.mubr.bf16.gmra.mrb[4].mxu0 %v662_v17  ;;  %626 = vmatmul.mubr.bf16.gmra.mrb[4].mxu1 %v663_v18 }
  0x85   :  { %v271_v22 = vpop.permute.xlu0 %270 }
  0x86   :  { %vm321_vm2 = vcmp.eq.s32.totalorder %v271_v22, %v564_v28 }
  0x89   :  { %v274_v37 = vpop.permute.xlu0 %273 }
  0x8a   :  { %vm322_vm4 = vcmp.eq.s32.totalorder %v274_v37, %v564_v28 }
  0xf5   :  { %v615_v24 = vpop.f32.mrb[0].mxu0  ;;  %v623_v25 = vpop.f32.mrb[0].mxu1 }
  0xf6   :  { %v189_v26 = vpop.f32.mrb[1].mxu0  ;;  %v221_v27 = vpop.f32.mrb[1].mxu1 }
  0xf7   :  { %v426_v29 = vsub.f32 1.0, %v189_v26  ;;  %v565_v30 = vadd.f32 -0.5, %v189_v26  ;;  %v616_v31 = vpop.f32.mrb[2].mxu0  ;;  %v624_v32 = vpop.f32.mrb[2].mxu1 }
  0xf8   :  { %v192_v33 = vpop.f32.mrb[3].mxu0  ;;  %v224_v34 = vpop.f32.mrb[3].mxu1 }
  0xf9   :  { %v458_v35 = vmax.f32 %v565_v30, 0.0  ;;  %v474_v36 = vsel %vm410_vm0, %v426_v29, 0.0  ;;  %v427_v38 = vsub.f32 1.0, %v192_v33  ;;  %v566_v39 = vadd.f32 -0.5, %v192_v33 }
  0xfb   :  { %v490_v40 = vsel %vm321_vm2, %v474_v36, %v458_v35  ;;  %v459_v41 = vmax.f32 %v566_v39, 0.0  ;;  %v475_v42 = vsel %vm411_vm1, %v427_v38, 0.0 }
  0xfc   :  { %v506_v46 = vsel %vm393_vm3, %v490_v40, 0.0 }
  0xfd   :  { %v491_v43 = vsel %vm322_vm4, %v475_v42, %v459_v41  ;;  %v619_v44 = vpop.f32.mrb[4].mxu0  ;;  %v627_v45 = vpop.f32.mrb[4].mxu1 }
  0xfe   :  { %v507_v47 = vsel %vm393_vm3, %v491_v43, 0.0  ;;  %v205_v48 = vpop.f32.mrb[5].mxu0  ;;  %v237_v49 = vpop.f32.mrb[5].mxu1 }
  0xff   :  { %v524_v50 = vadd.f32 %v507_v47, %v506_v46  ;;  %v620_v51 = vpop.f32.mrb[6].mxu0  ;;  %v628_v52 = vpop.f32.mrb[6].mxu1 }
 0x100   :  { %v208_v53 = vpop.f32.mrb[7].mxu0  ;;  %v240_v54 = vpop.f32.mrb[7].mxu1 }
 0x101   :  { %543 = vst [vmem:[%s754_s4] sm:$0xff] %v524_v50 }

</bundles_post_ra>
